<compile_context>
chip_gen: v5e
topology: v5e:2x2
jax: 0.10.0
libtpu: 0.0.40
codegen_flags: <defaults>
</compile_context>

<pallas_src>
import functools

import jax
import jax.numpy as jnp
from jax.experimental import pallas as pl
from jax.experimental.pallas import tpu as pltpu

_LANES = 128
_MIN_PALLAS_BYTES = 256 * 1024   # below this, XLA's fused elementwise is already at roofline


# ---------------------------------------------------------------------------
# Kernels
# ---------------------------------------------------------------------------
def _glu_kernel(x_ref, o_ref):
    # Compute in f32 for the EUP transcendental; op is memory-bound so the cast is free.
    x = x_ref[...].astype(jnp.float32)
    o_ref[...] = (x * jax.nn.sigmoid(x)).astype(o_ref.dtype)


def _glu_kernel_one_transcendental(x_ref, o_ref):
    # sigmoid(x) = 0.5 * (tanh(0.5 * x) + 1): a single EUP op per element.
    # Used for 8-bit dtypes, where on v7x the element rate (~0.8 Telem/s per TC)
    # approaches the single EUP's throughput and sigmoid's 2 transcendentals/elem
    # would become co-binding.
    x = x_ref[...].astype(jnp.float32)
    o_ref[...] = (x * (0.5 * jnp.tanh(0.5 * x) + 0.5)).astype(o_ref.dtype)


def _glu_xla(x):
    # Same math (f32 compute, cast back) as the kernel so small-size / tail
    # fallbacks agree bit-for-bit with the Pallas path.
    xf = x.astype(jnp.float32)
    return (xf * jax.nn.sigmoid(xf)).astype(x.dtype)


# ---------------------------------------------------------------------------
# Generation-aware block configuration (trace-time, static)
# ---------------------------------------------------------------------------
def _block_config(itemsize):
    """Returns (row_tile_big, sublane_tile, vmem_limit_bytes_or_None)."""
    target_block_bytes = 2 * 1024 * 1024   # safe default: v6e / v5e / unknown
    vmem_limit = None
    try:
        kind = jax.devices()[0].device_kind.lower()
    except Exception:  # pragma: no cover - e.g. interpret mode / no devices
        kind = ""
    if "v7" in kind or "7x" in kind:
        # v7x: ~1.6 TB/s HBM per TC -> 2 MiB blocks stream in ~1.3 us and per-step
        # overhead becomes visible; 4 MiB blocks recover a few % of roofline.
        # 4 buffers x 4 MiB = 16 MiB; give the compiler explicit headroom.
        target_block_bytes = 4 * 1024 * 1024
        vmem_limit = 32 * 1024 * 1024
    elif "v5 lite" in kind or "v5lite" in kind or "v5e" in kind:
        # v5e: 16 MiB scoped-VMEM default -> keep 2 MiB blocks (8 MiB double-buffered).
        target_block_bytes = 2 * 1024 * 1024

    # Sublane tile per dtype: 8 (f32), 16 (bf16/f16), 32 (int8/fp8).
    sublane = max(8, 32 // itemsize)
    tr_big = max(sublane,
                 (target_block_bytes // (_LANES * itemsize)) // sublane * sublane)
    return tr_big, sublane, vmem_limit


# ---------------------------------------------------------------------------
# Pallas launch on a lane-dense (rows, 128) slab
# ---------------------------------------------------------------------------
def _glu_pallas_2d(x2d, *, donate_input):
    rows, lanes = x2d.shape
    assert lanes == _LANES
    itemsize = jnp.dtype(x2d.dtype).itemsize
    tr_big, sublane, vmem_limit = _block_config(itemsize)

    if rows >= tr_big:
        tr = tr_big
    elif rows >= sublane:
        tr = (rows // sublane) * sublane
    elif rows >= 8:
        tr = (rows // 8) * 8
    else:
        tr = rows  # full-dim block is allowed when rows < 8

    grid = (pl.cdiv(rows, tr),)  # masked partial last block

    kernel = _glu_kernel_one_transcendental if itemsize == 1 else _glu_kernel
    n = rows * _LANES
    cost = pl.CostEstimate(
        flops=4 * n,
        transcendentals=(n if itemsize == 1 else 2 * n),  # tanh vs exp+div
        bytes_accessed=2 * n * itemsize,
    )

    # TODO(synk): if an xprof trace on v7x shows exposed DMA at step boundaries,
    # add pipeline_mode=pl.Buffered(3) on the input BlockSpec (skip on v5e).
    return pl.pallas_call(
        kernel,
        out_shape=jax.ShapeDtypeStruct((rows, _LANES), x2d.dtype),
        grid_spec=pltpu.PrefetchScalarGridSpec(
            num_scalar_prefetch=0,
            grid=grid,
            in_specs=[pl.BlockSpec((tr, _LANES), lambda i: (i, 0))],
            out_specs=pl.BlockSpec((tr, _LANES), lambda i: (i, 0)),
        ),
        compiler_params=pltpu.CompilerParams(
            dimension_semantics=("parallel",),   # shards grid across TCs on v7x
            vmem_limit_bytes=vmem_limit,
        ),
        cost_estimate=cost,
        # When the caller donates x, the input buffer is reused for the output
        # (halves peak HBM footprint). If the buffer cannot be donated XLA
        # inserts a defensive copy, so this is opt-in.
        input_output_aliases=({0: 0} if donate_input else {}),
    )(x2d)


# ---------------------------------------------------------------------------
# Public wrapper
# ---------------------------------------------------------------------------
def _glu_impl(x, *, min_pallas_bytes=_MIN_PALLAS_BYTES, donate_input=False):
    """Elementwise x * sigmoid(x) via a Pallas TPU kernel. Works for any shape."""
    orig_shape = x.shape
    itemsize = jnp.dtype(x.dtype).itemsize
    total = x.size

    # Tiny inputs: launch/grid overhead dominates; plain XLA is already at roofline.
    if total == 0 or total * itemsize < min_pallas_bytes:
        return _glu_xla(x)

    x_flat = jnp.ravel(x)
    rem = total % _LANES

    if rem == 0:
        out2d = _glu_pallas_2d(x_flat.reshape(total // _LANES, _LANES),
                               donate_input=donate_input)
        return out2d.reshape(orig_shape)

    # Ragged tail (< 128 elements): Pallas on the aligned prefix, plain XLA on the
    # tail. Avoids the pad-input / slice-output round trips through HBM.
    aligned = total - rem
    if aligned == 0:
        return _glu_xla(x)
    main = x_flat[:aligned].reshape(aligned // _LANES, _LANES)
    out_main = _glu_pallas_2d(main, donate_input=donate_input).reshape(-1)
    out_tail = _glu_xla(x_flat[aligned:])
    return jnp.concatenate([out_main, out_tail]).reshape(orig_shape)


# jit so the ravel / reshape / concat around the pallas_call fuse / become bitcasts
# instead of separate dispatches.
glu = jax.jit(_glu_impl, static_argnames=("min_pallas_bytes", "donate_input"))


# ---------------------------------------------------------------------------
# Self-test
# ---------------------------------------------------------------------------
if __name__ == "__main__":
    key = jax.random.PRNGKey(0)

    # Spec-consistent small input (batch=2, channels=4, 16x16 feature map).
    x = jax.random.normal(key, (2, 4, 16, 16), dtype=jnp.float32)
    y = glu(x, min_pallas_bytes=0)  # force the Pallas path even for this tiny input
    jax.block_until_ready(y)
    y_ref = x * jax.nn.sigmoid(x)
    assert y.shape == x.shape and y.dtype == x.dtype
    assert jnp.allclose(y, y_ref, atol=1e-6, rtol=1e-6), "mismatch vs reference (small)"

    # Larger input exercising the multi-block path (grid >= 2 blocks on every gen).
    x_big = jax.random.normal(jax.random.PRNGKey(1), (8, 64, 64, 64), dtype=jnp.float32)
    y_big = glu(x_big)
    jax.block_until_ready(y_big)
    y_big_ref = x_big * jax.nn.sigmoid(x_big)
    assert y_big.shape == x_big.shape and y_big.dtype == x_big.dtype
    assert jnp.allclose(y_big, y_big_ref, atol=1e-6, rtol=1e-6), "mismatch vs reference (big)"

    # Donated-buffer path (input_output_aliases={0: 0}) stays correct.
    y_don = glu(x_big, donate_input=True)
    jax.block_until_ready(y_don)
    assert jnp.allclose(y_don, y_big_ref, atol=1e-6, rtol=1e-6), "mismatch vs reference (donated)"

    # Ragged size (total % 128 != 0): Pallas prefix + XLA tail, masked partial block.
    x_rag = jax.random.normal(jax.random.PRNGKey(2), (3, 5, 7, 11), dtype=jnp.float32)
    y_rag = glu(x_rag, min_pallas_bytes=0)
    jax.block_until_ready(y_rag)
    y_rag_ref = x_rag * jax.nn.sigmoid(x_rag)
    assert y_rag.shape == x_rag.shape and y_rag.dtype == x_rag.dtype
    assert jnp.allclose(y_rag, y_rag_ref, atol=1e-6, rtol=1e-6), "mismatch vs reference (ragged)"

    # bf16 path (16-row sublane tile, f32 internal compute).
    x_bf = jax.random.normal(jax.random.PRNGKey(3), (2, 8, 32, 32), dtype=jnp.bfloat16)
    y_bf = glu(x_bf, min_pallas_bytes=0)
    jax.block_until_ready(y_bf)
    xf = x_bf.astype(jnp.float32)
    y_bf_ref = (xf * jax.nn.sigmoid(xf)).astype(jnp.bfloat16)
    assert y_bf.shape == x_bf.shape and y_bf.dtype == x_bf.dtype
    assert jnp.allclose(y_bf.astype(jnp.float32), y_bf_ref.astype(jnp.float32),
                        atol=3e-2, rtol=1e-2), "mismatch vs reference (bf16)"

    print("KERNEL_OK")
</pallas_src>

<mosaic_0001>
module attributes {stable_mosaic.version = 11 : i64} {
  func.func @_glu_kernel(%arg0: i32, %arg1: memref<16x128xf32, #tpu.memory_space<vmem>>, %arg2: memref<16x128xf32, #tpu.memory_space<vmem>>) attributes {dimension_semantics = [#tpu.dimension_semantics<parallel>], iteration_bounds = array<i64: 1>, scalar_prefetch = 0 : i64, scratch_operands = 0 : i64, tpu.core_type = #tpu.core_type<tc>, window_params = [{transform_indices = @transform_0, window_bounds = array<i64: 16, 128>}, {transform_indices = @transform_1, window_bounds = array<i64: 16, 128>}]} {
    %c0 = arith.constant 0 : index
    %c0_0 = arith.constant 0 : index
    %0 = vector.load %arg1[%c0, %c0_0] : memref<16x128xf32, #tpu.memory_space<vmem>>, vector<16x128xf32>
    %1 = arith.negf %0 : vector<16x128xf32>
    %2 = math.exp %1 : vector<16x128xf32>
    %cst = arith.constant 1.000000e+00 : f32
    %3 = vector.broadcast %cst : f32 to vector<16x128xf32>
    %4 = arith.addf %3, %2 : vector<16x128xf32>
    %5 = arith.divf %3, %4 : vector<16x128xf32>
    %6 = arith.mulf %0, %5 : vector<16x128xf32>
    %c0_1 = arith.constant 0 : index
    %c0_2 = arith.constant 0 : index
    %7 = vector.load %arg2[%c0_1, %c0_2] : memref<16x128xf32, #tpu.memory_space<vmem>>, vector<16x128xf32>
    tpu.vector_store %arg2[%c0_1, %c0_2], %6 {strides = array<i32>} : memref<16x128xf32, #tpu.memory_space<vmem>>, vector<16x128xf32>,
    return
  }
  func.func @transform_0(%arg0: i32) -> (i32, i32) {
    %c0_i32 = arith.constant 0 : i32
    %c0_i32_0 = arith.constant 0 : i32
    return %arg0, %c0_i32 : i32, i32
  }
  func.func @transform_1(%arg0: i32) -> (i32, i32) {
    %c0_i32 = arith.constant 0 : i32
    %c0_i32_0 = arith.constant 0 : i32
    return %arg0, %c0_i32 : i32, i32
  }
}

</mosaic_0001>

<bundles_post_ra>
// kernel: _glu_impl.1
= control target key start
LH: loop header
LB: loop body
LE: loop exit
PB: predicated region body
PF: predicated region fallthrough
CT: control target
= control target key end

     0   :  { %s88_s0 = inlined_call_operand.vmem [shape: f32[16,128], index: 0, kind: input, shape index: {}]   ;;  %s89_s1 = inlined_call_operand.vmem [shape: f32[16,128], index: 1, kind: output, shape index: {}]  }
   0x1   :  { %v8_v0 = vld [vmem:[%s88_s0] sm:$0xff]  ;;  %v9_v1 = vld [vmem:[%s88_s0 + $0x8] sm:$0xff] }
   0x2   :  { %v56_v2 = vmul.f32 -1.442695, %v8_v0  ;;  %v57_v3 = vmul.f32 -1.442695, %v9_v1 }
   0x4   :  { %58 = vpow2.f32 %v56_v2 }
   0x5   :  { %60 = vpow2.f32 %v57_v3 }
   0xa   :  { %v59_v4 = vpop.eup %58 }
   0xb   :  { %v61_v5 = vpop.eup %60  ;;  %v16_v6 = vadd.f32 1.0, %v59_v4 }
   0xc   :  { %v17_v7 = vadd.f32 1.0, %v61_v5 }
   0xd   :  { %62 = vrcp.f32 %v16_v6  ;;  %vm23_vm0 = vweird.f32 %v16_v6  ;;  %v29_v11 = vand.u32 2147483648, %v16_v6  ;;  %v27_v14 = vand.u32 2147483647, %v16_v6 }
   0xe   :  { %64 = vrcp.f32 %v17_v7  ;;  %v44_v15 = vand.u32 2147483648, %v17_v7  ;;  %vm38_vm2 = vweird.f32 %v17_v7  ;;  %v42_v17 = vand.u32 2147483647, %v17_v7 }
   0xf   :  { %v30_v19 = vor.u32 1.1754944e-38, %v29_v11  ;;  %vm28_vm5 = vcmp.eq.f32.partialorder %v27_v14, 8.507059e+37 }
  0x10   :  { %v45_v22 = vor.u32 1.1754944e-38, %v44_v15  ;;  %vm43_vm7 = vcmp.eq.f32.partialorder %v42_v17, 8.507059e+37 }
  0x13   :  { %v63_v8 = vpop.eup %62 }
  0x14   :  { %v65_v9 = vpop.eup %64  ;;  %v19_v10 = vmul.f32 %v63_v8, %v16_v6  ;;  %vm24_vm1 = vweird.f32 %v63_v8 }
  0x15   :  { %v34_v12 = vmul.f32 %v65_v9, %v17_v7  ;;  %vm39_vm3 = vweird.f32 %v65_v9  ;;  %vm25_vm4 = vmor %vm23_vm0, %vm24_vm1 }
  0x16   :  { %v20_v13 = vsub.f32 1.0, %v19_v10  ;;  %vm40_vm6 = vmor %vm38_vm2, %vm39_vm3 }
  0x17   :  { %v35_v16 = vsub.f32 1.0, %v34_v12 }
  0x18   :  { %v21_v18 = vmul.f32 %v63_v8, %v20_v13 }
  0x19   :  { %v36_v20 = vmul.f32 %v65_v9, %v35_v16 }
  0x1a   :  { %v22_v21 = vadd.f32 %v63_v8, %v21_v18 }
  0x1b   :  { %v37_v23 = vadd.f32 %v65_v9, %v36_v20 }
  0x1c   :  { %v26_v24 = vsel %vm25_vm4, %v63_v8, %v22_v21 }
  0x1d   :  { %v31_v25 = vsel %vm28_vm5, %v30_v19, %v26_v24  ;;  %v41_v26 = vsel %vm40_vm6, %v65_v9, %v37_v23 }
  0x1e   :  { %v48_v27 = vmul.f32 %v31_v25, %v8_v0  ;;  %v46_v28 = vsel %vm43_vm7, %v45_v22, %v41_v26 }
  0x1f   :  { %v49_v29 = vmul.f32 %v46_v28, %v9_v1 }
  0x20   :  { %50 = vst [vmem:[%s89_s1] sm:$0xff] %v48_v27 }
  0x21   :  { %51 = vst [vmem:[%s89_s1 + $0x8] sm:$0xff] %v49_v29 }

</bundles_post_ra>
